<compile_context>
chip_gen: v6e
topology: v6e:2x2x1
jax: 0.10.0
libtpu: 0.0.40
codegen_flags: <defaults>
</compile_context>

<pallas_src>
import functools

import jax
import jax.numpy as jnp
from jax.experimental import pallas as pl
from jax.experimental.pallas import tpu as pltpu

D = 128        # lane-dense padded feature width for every layer
B_ROWS = 8     # bias slab rows (6 layers padded up to a full sublane tile)


def _round_up(x, m):
    return (x + m - 1) // m * m


def _mlp_kernel(x_ref, w_ref, b_ref, out_ref):
    """Fused 6-layer MLP forward on one [tm, *] activation tile.

    x_ref   : [tm, in_dim]     f32 (raw, unpadded input features)
    w_ref   : [n_layers, D, D] bf16/f32, zero-padded, resident in VMEM
    b_ref   : [B_ROWS, D]      f32, row i = bias of layer i (zero-padded)
    out_ref : [tm, D]          f32 (first num_classes cols are the real output)
    """
    n_layers = w_ref.shape[0]
    in_dim = x_ref.shape[-1]
    cdt = w_ref.dtype                       # matmul input dtype (bf16 or f32)
    b_all = b_ref[...]                      # [B_ROWS, D] f32 (one vreg)

    def sigmoid(z):                         # single EUP tanh per element
        return 0.5 * (jnp.tanh(0.5 * z) + 1.0)

    # Layer 0: contract only the real input features against the first in_dim
    # rows of the padded weight (kernel-side "padding" -- no HBM pad pass).
    w0 = w_ref[0][:in_dim, :]
    h = jnp.dot(x_ref[...].astype(cdt), w0,
                preferred_element_type=jnp.float32) + b_all[0:1, :]
    h = sigmoid(h)

    # Layers 1..n-1 (static unroll: 5 lane-dense [*,128]x[128,128] MXU matmuls).
    # Zero-padded activation columns become sigmoid(0)=0.5 but are annihilated
    # by the zero weight rows of the next layer, so the math is exact.
    for i in range(1, n_layers):
        z = jnp.dot(h.astype(cdt), w_ref[i],
                    preferred_element_type=jnp.float32) + b_all[i:i + 1, :]
        h = sigmoid(z) if i < n_layers - 1 else z   # final layer: no activation

    out_ref[...] = h.astype(out_ref.dtype)


def pack_params(params, weights_dtype=jnp.bfloat16):
    """Pack per-layer (W [in,out], b [1,out]) into lane-dense slabs (done once).

    weights_dtype=bfloat16 (default) is the fast MXU path on v5e/v6e/v7x;
    pass jnp.float32 for exact parity with the f32 reference.

    Returns:
      w_packed : [n_layers, D, D]  zero-padded, weights_dtype
      b_packed : [B_ROWS, D]       zero-padded, f32
    """
    n_layers = len(params)
    w_packed = jnp.zeros((n_layers, D, D), jnp.float32)
    b_packed = jnp.zeros((max(B_ROWS, _round_up(n_layers, 8)), D), jnp.float32)
    for i, (w, b) in enumerate(params):
        fi, fo = w.shape
        assert fi <= D and fo <= D, "layer width exceeds packed width D=128"
        w_packed = w_packed.at[i, :fi, :fo].set(w.astype(jnp.float32))
        b_packed = b_packed.at[i, :fo].set(b.reshape(-1).astype(jnp.float32))
    return w_packed.astype(weights_dtype), b_packed


def net_forward(x, w_packed, b_packed, *, tile_m=512):
    """Forward pass of `Net`.

    x: [batch, input_size] f32, unpadded.  Returns the lane-dense [batch, 128]
    output slab; only the first num_classes columns are real.  Slice (or fuse)
    in the consumer rather than inside this call so the kernel's store stays
    lane-dense and no extra HBM round trip is added.
    """
    batch, in_dim = x.shape
    n_layers = w_packed.shape[0]
    b_rows = b_packed.shape[0]

    # Batch tile: big tiles amortize per-step overhead (sweeps: 512 ~= 85% of
    # HBM roofline), but cap so the "parallel" batch grid has >= 2 steps when
    # the batch allows it (keeps both v7x TensorCores busy).
    tm = min(tile_m, _round_up(batch, 8))
    if batch > 8:
        tm = min(tm, _round_up(pl.cdiv(batch, 2), 8))
    grid_m = pl.cdiv(batch, tm)            # ragged last tile: stores are masked

    return pl.pallas_call(
        _mlp_kernel,
        out_shape=jax.ShapeDtypeStruct((batch, D), jnp.float32),
        grid=(grid_m,),
        in_specs=[
            # Unpadded activation tile streams over the batch grid (last dim
            # equals the full array dim, satisfying the (8,128) rule).
            pl.BlockSpec((tm, in_dim), lambda i: (i, 0)),
            # Packed weights / biases: constant index_map -> DMA'd once,
            # resident in VMEM across the whole grid.
            pl.BlockSpec((n_layers, D, D), lambda i: (0, 0, 0)),
            pl.BlockSpec((b_rows, D), lambda i: (0, 0)),
        ],
        out_specs=pl.BlockSpec((tm, D), lambda i: (i, 0)),
        compiler_params=pltpu.CompilerParams(
            dimension_semantics=("parallel",),   # megacore split on v7x
        ),
    )(x, w_packed, b_packed)


def init_params(key, sizes):
    """Deterministic init mirroring nn.Linear's uniform init.

    sizes = [input_size, h_1, ..., h_5, num_classes]; W stored as [in, out]
    (x @ W + b  ==  PyTorch's x @ W_pt.T + b).
    """
    params = []
    for i in range(len(sizes) - 1):
        fan_in, fan_out = sizes[i], sizes[i + 1]
        key, wk, bk = jax.random.split(key, 3)
        bound = 1.0 / jnp.sqrt(fan_in)
        w = jax.random.uniform(wk, (fan_in, fan_out), jnp.float32, -bound, bound)
        b = jax.random.uniform(bk, (1, fan_out), jnp.float32, -bound, bound)
        params.append((w, b))
    return params


def reference_forward(x, params):
    """Pure-JAX reference for the correctness check."""
    h = x
    for i, (w, b) in enumerate(params):
        h = h @ w + b
        if i < len(params) - 1:
            h = jax.nn.sigmoid(h)
    return h


if __name__ == "__main__":
    # Shapes consistent with the module:
    # input_size=32, h_1..h_5 = 64, 32, 64, 32, 64, num_classes=16
    sizes = [32, 64, 32, 64, 32, 64, 16]
    batch = 100           # not a tile multiple: exercises the ragged last tile
    num_classes = sizes[-1]

    key = jax.random.PRNGKey(0)
    key, xk = jax.random.split(key)
    x = jax.random.normal(xk, (batch, sizes[0]), jnp.float32)
    params = init_params(key, sizes)
    ref = reference_forward(x, params)

    fwd = jax.jit(functools.partial(net_forward, tile_m=512))

    # Fast path: bf16 weights on the MXU (default), f32 activations/accum.
    w_bf16, b_f32 = pack_params(params)
    out = jax.block_until_ready(fwd(x, w_bf16, b_f32))
    assert out.shape == (batch, D)
    assert jnp.allclose(out[:, :num_classes], ref, atol=5e-2, rtol=5e-2), \
        "bf16 path mismatch vs reference"

    # Exact-parity path: f32 weights.
    w_f32, _ = pack_params(params, weights_dtype=jnp.float32)
    out_f32 = jax.block_until_ready(fwd(x, w_f32, b_f32))
    assert jnp.allclose(out_f32[:, :num_classes], ref, atol=1e-4, rtol=1e-4), \
        "f32 path mismatch vs reference"

    print("KERNEL_OK")
</pallas_src>

<mosaic_0001>
module attributes {stable_mosaic.version = 11 : i64} {
  func.func @_mlp_kernel(%arg0: i32, %arg1: memref<56x32xf32, #tpu.memory_space<vmem>>, %arg2: memref<6x128x128xbf16, #tpu.memory_space<vmem>>, %arg3: memref<8x128xf32, #tpu.memory_space<vmem>>, %arg4: memref<56x128xf32, #tpu.memory_space<vmem>>) attributes {dimension_semantics = [#tpu.dimension_semantics<parallel>], iteration_bounds = array<i64: 2>, scalar_prefetch = 0 : i64, scratch_operands = 0 : i64, tpu.core_type = #tpu.core_type<tc>, window_params = [{transform_indices = @transform_0, window_bounds = array<i64: 56, 32>}, {pipeline_mode = #tpu.pipeline_mode<synchronous>, transform_indices = @transform_1, window_bounds = array<i64: 6, 128, 128>}, {pipeline_mode = #tpu.pipeline_mode<synchronous>, transform_indices = @transform_2, window_bounds = array<i64: 8, 128>}, {transform_indices = @transform_3, window_bounds = array<i64: 56, 128>}]} {
    %c0 = arith.constant 0 : index
    %c0_0 = arith.constant 0 : index
    %0 = vector.load %arg3[%c0, %c0_0] : memref<8x128xf32, #tpu.memory_space<vmem>>, vector<8x128xf32>
    %c0_1 = arith.constant 0 : index
    %c0_2 = arith.constant 0 : index
    %c0_3 = arith.constant 0 : index
    %1 = vector.load %arg2[%c0_1, %c0_2, %c0_3] : memref<6x128x128xbf16, #tpu.memory_space<vmem>>, vector<1x128x128xbf16>
    %2 = vector.shape_cast %1 : vector<1x128x128xbf16> to vector<128x128xbf16>
    %3 = vector.extract_strided_slice %2 {offsets = [0, 0], sizes = [32, 128], strides = [1, 1]} : vector<128x128xbf16> to vector<32x128xbf16>
    %c0_4 = arith.constant 0 : index
    %c0_5 = arith.constant 0 : index
    %4 = vector.load %arg1[%c0_4, %c0_5] : memref<56x32xf32, #tpu.memory_space<vmem>>, vector<56x32xf32>
    %5 = arith.truncf %4 : vector<56x32xf32> to vector<56x32xbf16>
    %cst = arith.constant dense<0.000000e+00> : vector<56x128xf32>
    %6 = tpu.matmul %5, %3, %cst {dimension_numbers = #tpu.dot_dimension_numbers<[1], [0], [0], [1], [0, 0, 1, 1], [], []>} : vector<56x32xbf16>, vector<32x128xbf16>, vector<56x128xf32> -> vector<56x128xf32>
    %7 = vector.extract_strided_slice %0 {offsets = [0, 0], sizes = [1, 128], strides = [1, 1]} : vector<8x128xf32> to vector<1x128xf32>
    %8 = vector.broadcast %7 : vector<1x128xf32> to vector<56x128xf32>
    %9 = arith.addf %6, %8 : vector<56x128xf32>
    %cst_6 = arith.constant 5.000000e-01 : f32
    %10 = vector.broadcast %cst_6 : f32 to vector<56x128xf32>
    %11 = arith.mulf %10, %9 : vector<56x128xf32>
    %12 = math.tanh %11 : vector<56x128xf32>
    %cst_7 = arith.constant 1.000000e+00 : f32
    %13 = vector.broadcast %cst_7 : f32 to vector<56x128xf32>
    %14 = arith.addf %12, %13 : vector<56x128xf32>
    %cst_8 = arith.constant 5.000000e-01 : f32
    %15 = vector.broadcast %cst_8 : f32 to vector<56x128xf32>
    %16 = arith.mulf %15, %14 : vector<56x128xf32>
    %17 = arith.truncf %16 : vector<56x128xf32> to vector<56x128xbf16>
    %c1 = arith.constant 1 : index
    %c0_9 = arith.constant 0 : index
    %c0_10 = arith.constant 0 : index
    %18 = vector.load %arg2[%c1, %c0_9, %c0_10] : memref<6x128x128xbf16, #tpu.memory_space<vmem>>, vector<1x128x128xbf16>
    %19 = vector.shape_cast %18 : vector<1x128x128xbf16> to vector<128x128xbf16>
    %cst_11 = arith.constant dense<0.000000e+00> : vector<56x128xf32>
    %20 = tpu.matmul %17, %19, %cst_11 {dimension_numbers = #tpu.dot_dimension_numbers<[1], [0], [0], [1], [0, 0, 1, 1], [], []>} : vector<56x128xbf16>, vector<128x128xbf16>, vector<56x128xf32> -> vector<56x128xf32>
    %21 = vector.extract_strided_slice %0 {offsets = [1, 0], sizes = [1, 128], strides = [1, 1]} : vector<8x128xf32> to vector<1x128xf32>
    %22 = vector.broadcast %21 : vector<1x128xf32> to vector<56x128xf32>
    %23 = arith.addf %20, %22 : vector<56x128xf32>
    %cst_12 = arith.constant 5.000000e-01 : f32
    %24 = vector.broadcast %cst_12 : f32 to vector<56x128xf32>
    %25 = arith.mulf %24, %23 : vector<56x128xf32>
    %26 = math.tanh %25 : vector<56x128xf32>
    %cst_13 = arith.constant 1.000000e+00 : f32
    %27 = vector.broadcast %cst_13 : f32 to vector<56x128xf32>
    %28 = arith.addf %26, %27 : vector<56x128xf32>
    %cst_14 = arith.constant 5.000000e-01 : f32
    %29 = vector.broadcast %cst_14 : f32 to vector<56x128xf32>
    %30 = arith.mulf %29, %28 : vector<56x128xf32>
    %31 = arith.truncf %30 : vector<56x128xf32> to vector<56x128xbf16>
    %c2 = arith.constant 2 : index
    %c0_15 = arith.constant 0 : index
    %c0_16 = arith.constant 0 : index
    %32 = vector.load %arg2[%c2, %c0_15, %c0_16] : memref<6x128x128xbf16, #tpu.memory_space<vmem>>, vector<1x128x128xbf16>
    %33 = vector.shape_cast %32 : vector<1x128x128xbf16> to vector<128x128xbf16>
    %cst_17 = arith.constant dense<0.000000e+00> : vector<56x128xf32>
    %34 = tpu.matmul %31, %33, %cst_17 {dimension_numbers = #tpu.dot_dimension_numbers<[1], [0], [0], [1], [0, 0, 1, 1], [], []>} : vector<56x128xbf16>, vector<128x128xbf16>, vector<56x128xf32> -> vector<56x128xf32>
    %35 = vector.extract_strided_slice %0 {offsets = [2, 0], sizes = [1, 128], strides = [1, 1]} : vector<8x128xf32> to vector<1x128xf32>
    %36 = vector.broadcast %35 : vector<1x128xf32> to vector<56x128xf32>
    %37 = arith.addf %34, %36 : vector<56x128xf32>
    %cst_18 = arith.constant 5.000000e-01 : f32
    %38 = vector.broadcast %cst_18 : f32 to vector<56x128xf32>
    %39 = arith.mulf %38, %37 : vector<56x128xf32>
    %40 = math.tanh %39 : vector<56x128xf32>
    %cst_19 = arith.constant 1.000000e+00 : f32
    %41 = vector.broadcast %cst_19 : f32 to vector<56x128xf32>
    %42 = arith.addf %40, %41 : vector<56x128xf32>
    %cst_20 = arith.constant 5.000000e-01 : f32
    %43 = vector.broadcast %cst_20 : f32 to vector<56x128xf32>
    %44 = arith.mulf %43, %42 : vector<56x128xf32>
    %45 = arith.truncf %44 : vector<56x128xf32> to vector<56x128xbf16>
    %c3 = arith.constant 3 : index
    %c0_21 = arith.constant 0 : index
    %c0_22 = arith.constant 0 : index
    %46 = vector.load %arg2[%c3, %c0_21, %c0_22] : memref<6x128x128xbf16, #tpu.memory_space<vmem>>, vector<1x128x128xbf16>
    %47 = vector.shape_cast %46 : vector<1x128x128xbf16> to vector<128x128xbf16>
    %cst_23 = arith.constant dense<0.000000e+00> : vector<56x128xf32>
    %48 = tpu.matmul %45, %47, %cst_23 {dimension_numbers = #tpu.dot_dimension_numbers<[1], [0], [0], [1], [0, 0, 1, 1], [], []>} : vector<56x128xbf16>, vector<128x128xbf16>, vector<56x128xf32> -> vector<56x128xf32>
    %49 = vector.extract_strided_slice %0 {offsets = [3, 0], sizes = [1, 128], strides = [1, 1]} : vector<8x128xf32> to vector<1x128xf32>
    %50 = vector.broadcast %49 : vector<1x128xf32> to vector<56x128xf32>
    %51 = arith.addf %48, %50 : vector<56x128xf32>
    %cst_24 = arith.constant 5.000000e-01 : f32
    %52 = vector.broadcast %cst_24 : f32 to vector<56x128xf32>
    %53 = arith.mulf %52, %51 : vector<56x128xf32>
    %54 = math.tanh %53 : vector<56x128xf32>
    %cst_25 = arith.constant 1.000000e+00 : f32
    %55 = vector.broadcast %cst_25 : f32 to vector<56x128xf32>
    %56 = arith.addf %54, %55 : vector<56x128xf32>
    %cst_26 = arith.constant 5.000000e-01 : f32
    %57 = vector.broadcast %cst_26 : f32 to vector<56x128xf32>
    %58 = arith.mulf %57, %56 : vector<56x128xf32>
    %59 = arith.truncf %58 : vector<56x128xf32> to vector<56x128xbf16>
    %c4 = arith.constant 4 : index
    %c0_27 = arith.constant 0 : index
    %c0_28 = arith.constant 0 : index
    %60 = vector.load %arg2[%c4, %c0_27, %c0_28] : memref<6x128x128xbf16, #tpu.memory_space<vmem>>, vector<1x128x128xbf16>
    %61 = vector.shape_cast %60 : vector<1x128x128xbf16> to vector<128x128xbf16>
    %cst_29 = arith.constant dense<0.000000e+00> : vector<56x128xf32>
    %62 = tpu.matmul %59, %61, %cst_29 {dimension_numbers = #tpu.dot_dimension_numbers<[1], [0], [0], [1], [0, 0, 1, 1], [], []>} : vector<56x128xbf16>, vector<128x128xbf16>, vector<56x128xf32> -> vector<56x128xf32>
    %63 = vector.extract_strided_slice %0 {offsets = [4, 0], sizes = [1, 128], strides = [1, 1]} : vector<8x128xf32> to vector<1x128xf32>
    %64 = vector.broadcast %63 : vector<1x128xf32> to vector<56x128xf32>
    %65 = arith.addf %62, %64 : vector<56x128xf32>
    %cst_30 = arith.constant 5.000000e-01 : f32
    %66 = vector.broadcast %cst_30 : f32 to vector<56x128xf32>
    %67 = arith.mulf %66, %65 : vector<56x128xf32>
    %68 = math.tanh %67 : vector<56x128xf32>
    %cst_31 = arith.constant 1.000000e+00 : f32
    %69 = vector.broadcast %cst_31 : f32 to vector<56x128xf32>
    %70 = arith.addf %68, %69 : vector<56x128xf32>
    %cst_32 = arith.constant 5.000000e-01 : f32
    %71 = vector.broadcast %cst_32 : f32 to vector<56x128xf32>
    %72 = arith.mulf %71, %70 : vector<56x128xf32>
    %73 = arith.truncf %72 : vector<56x128xf32> to vector<56x128xbf16>
    %c5 = arith.constant 5 : index
    %c0_33 = arith.constant 0 : index
    %c0_34 = arith.constant 0 : index
    %74 = vector.load %arg2[%c5, %c0_33, %c0_34] : memref<6x128x128xbf16, #tpu.memory_space<vmem>>, vector<1x128x128xbf16>
    %75 = vector.shape_cast %74 : vector<1x128x128xbf16> to vector<128x128xbf16>
    %cst_35 = arith.constant dense<0.000000e+00> : vector<56x128xf32>
    %76 = tpu.matmul %73, %75, %cst_35 {dimension_numbers = #tpu.dot_dimension_numbers<[1], [0], [0], [1], [0, 0, 1, 1], [], []>} : vector<56x128xbf16>, vector<128x128xbf16>, vector<56x128xf32> -> vector<56x128xf32>
    %77 = vector.extract_strided_slice %0 {offsets = [5, 0], sizes = [1, 128], strides = [1, 1]} : vector<8x128xf32> to vector<1x128xf32>
    %78 = vector.broadcast %77 : vector<1x128xf32> to vector<56x128xf32>
    %79 = arith.addf %76, %78 : vector<56x128xf32>
    %c0_36 = arith.constant 0 : index
    %c0_37 = arith.constant 0 : index
    %80 = vector.load %arg4[%c0_36, %c0_37] : memref<56x128xf32, #tpu.memory_space<vmem>>, vector<56x128xf32>
    tpu.vector_store %arg4[%c0_36, %c0_37], %79 {strides = array<i32>} : memref<56x128xf32, #tpu.memory_space<vmem>>, vector<56x128xf32>,
    return
  }
  func.func @transform_0(%arg0: i32) -> (i32, i32) {
    %c0_i32 = arith.constant 0 : i32
    %c0_i32_0 = arith.constant 0 : i32
    return %arg0, %c0_i32 : i32, i32
  }
  func.func @transform_1(%arg0: i32) -> (i32, i32, i32) {
    %c0_i32 = arith.constant 0 : i32
    %c0_i32_0 = arith.constant 0 : i32
    %c0_i32_1 = arith.constant 0 : i32
    %c0_i32_2 = arith.constant 0 : i32
    return %c0_i32, %c0_i32_0, %c0_i32_1 : i32, i32, i32
  }
  func.func @transform_2(%arg0: i32) -> (i32, i32) {
    %c0_i32 = arith.constant 0 : i32
    %c0_i32_0 = arith.constant 0 : i32
    %c0_i32_1 = arith.constant 0 : i32
    return %c0_i32, %c0_i32_0 : i32, i32
  }
  func.func @transform_3(%arg0: i32) -> (i32, i32) {
    %c0_i32 = arith.constant 0 : i32
    %c0_i32_0 = arith.constant 0 : i32
    return %arg0, %c0_i32 : i32, i32
  }
}

</mosaic_0001>

<bundles_post_ra>
// kernel: net_forward.1
= control target key start
LH: loop header
LB: loop body
LE: loop exit
PB: predicated region body
PF: predicated region fallthrough
CT: control target
= control target key end

     0   :  { %8 = vsyncpa [#allocation3], 0  ;;  %s1957_s0 = inlined_call_operand.vmem [shape: f32[100,32], index: 0, kind: input, shape index: {}]   ;;  %s1958_s1 = inlined_call_operand.hbm [shape: bf16[6,128,128], index: 1, kind: input, shape index: {}]   ;;  %s1959_s2 = inlined_call_operand.vmem [shape: f32[8,128], index: 2, kind: input, shape index: {}]   ;;  %s1960_s3 = inlined_call_operand.hbm [shape: f32[100,128], index: 3, kind: output, shape index: {}]  }
   0x1   :  { %9 = vsyncpa [#allocation4], 0 }
   0x2   :  { %11 = vsyncpa [#allocation4 + $0x1], 0  ;;  %s1790_s12 = smov 0   ;;  %s1792_s13 = smov 0  }
   0x3   :  { %s1794_s14 = smov 0   ;;  %s1796_s15 = smov 0  }
   0x4 LB: > { %s1811_s16 = sadd.s32 4294967295, %s1762_s15   ;;  %s1247_s17 = sadd.s32 4294967294, %s1762_s15   ;;  %s1762_s15 = sphi %s1796_s15, %s1968_s15   ;;  %s1758_s14 = sphi %s1794_s14, %s1967_s14   ;;  %s1754_s13 = sphi %s1792_s13, %s1966_s13   ;;  %s1750_s12 = sphi %s1790_s12, %s1965_s12  }
   0x5   : > { %s1815_s18 = sadd.s32 1, %s1762_s15   ;;  %s92_s19 = sadd.s32 1, %s1758_s14 }
   0x6   : > { %s89_s20 = ssub.s32 %s1762_s15, %s1815_s18  ;;  %p102_p0 = scmp.ne.s32.totalorder %s1758_s14, %s1754_s13 }
   0x7   : > { %p90_p1 = scmp.eq.s32.totalorder %s89_s20, 0  ;;  %p103_p2 = scmp.eq.s32.totalorder %s1811_s16, 1 }
   0x8   : > { %p108_p3 = scmp.ne.s32.totalorder %s1754_s13, %s1750_s12  ;;  %p109_p4 = scmp.eq.s32.totalorder %s1247_s17, 1 }
   0x9   : > { %s1826_s21 = scalar_select %p90_p1, %s1758_s14, %s92_s19  }
   0xa   : > { %p1828_p5 = por %p103_p2, %p102_p0  ;;  %p1832_p6 = por %p109_p4, %p108_p3 }
   0xb   : > { %p1248_p7 = scmp.ge.s32.totalorder %s1762_s15, 1  ;;  %p116_p8 = scmp.lt.s32.totalorder %s1762_s15, 3 }
   0xc   : > { %s1962_s23 = scalar_select %p1832_p6, 1, 0 }
   0xd   : > { %p1520_p9 = scmp.eq.s32.totalorder %s1811_s16, 0  ;;  %p1839_p10 = pnand %p1248_p7, %p116_p8 }
   0xe   : > { %s1764_s25 = smov [#allocation2]  }
   0xf   : > { %s128_s26 = sshll.u32 %s1764_s25, 4  ;;  %p1512_p11 = pneg %p1839_p10  ;;  %s129_s26 = int_to_ptr.vmem [resolvable:$true] %s128_s26 }
  0x10   : > { %s1683_s27 = scalar_lea.vmem %s129_s26, 6144  ;;  %p1691_p3 = scmp.lt.s32.totalorder %s129_s26, %s129_s26 }
  0x11   : > { %p1513_p12 = pnand %p1520_p9, %p1512_p11  ;;  %p1684_p0 = scmp.ne.s32.totalorder %s129_s26, %s1683_s27 }
  0x12   : > { %p1692_p4 = scmp.lt.s32.totalorder %s1683_s27, %s1683_s27 }
  0x13   : > { %p1674_p13 = pneg %p1513_p12 }
  0x14   : > { %p1693_p6 = por %p1692_p4, %p1691_p3 }
  0x15   : > { %p1686_p1 = pnand %p1684_p0, %p1674_p13 }
  0x17   : > { %p1687_p2 = pneg %p1686_p1 }
  0x19   : > { %p1694_p7 = pnand %p1693_p6, %p1687_p2 }
  0x1b   : > { %1697 = shalt.err (!%p1694_p7)
}
  0x1c   : > { %s1765_s28 = smov 64   ;;  %s1766_s29 = smov 4  }
  0x1d   : > { %1515 = dma.hbm_to_vmem [thread:$0]  (!%p1513_p12), %s1958_s1, 6144, %s129_s26, [#allocation3], %s1765_s28, %s1765_s28, %s1766_s29  }
  0x1e   : > { %164 = sbr.rel (%p1839_p10) target bundleno = 1405 (0x57d), region = 32 }
  0x23   : > { %1741 = dma.done.wait (%p1520_p9), [#allocation3], 6144  }
  0x24   : > { %1743 = vsyncadd (%p1520_p9), [#allocation3], 4294961152  ;;  %s1857_s5 = smul.u32 7, %s1811_s16  ;;  %v1560_v0 = vld [vmem:[#allocation2 + $0x8] sm:$0xff]   ;;  %v1561_v1 = vld [vmem:[#allocation2] sm:$0xff]   ;;  %vm244_vm0 = vcmask 261120   ;;  %v228_v21 = vlaneseq }
  0x25   : > { %1374 = vmatprep.subr.bf16.mxu0 %v1560_v0  ;;  %v1562_v13 = vld [vmem:[#allocation2 + $0x78] sm:$0xff]   ;;  %v1563_v14 = vld [vmem:[#allocation2 + $0x70] sm:$0xff]   ;;  %v1564_v15 = vld [vmem:[#allocation2 + $0x68] sm:$0xff]   ;;  %s189_s19 = sand.u32 1, %s1754_s13  }
  0x26   : > { %p197_p6 = scmp.lt.s32.totalorder %s1857_s5, 12  ;;  %1375 = vmatpush3.bf16.msra.mxu0 %v1560_v0  ;;  %1386 = vmatprep.subr.bf16.mxu1 %v1562_v13  ;;  %v1565_v16 = vld [vmem:[#allocation2 + $0x60] sm:$0xff]   ;;  %v1566_v17 = vld [vmem:[#allocation2 + $0x58] sm:$0xff]   ;;  %v1567_v18 = vld [vmem:[#allocation2 + $0x50] sm:$0xff]   ;;  %v1868_v22 = vshrl.u32 %v228_v21, 7  ;;  %s1506_s20 = smul.u32 56, %s189_s19 }
  0x27   : > { %1376 = vmatprep.subr.bf16.mxu0 %v1561_v1  ;;  %1387 = vmatpush3.bf16.msra.mxu1 %v1562_v13  ;;  %v1568_v19 = vld [vmem:[#allocation2 + $0x48] sm:$0xff]   ;;  %v1569_v20 = vld [vmem:[#allocation2 + $0x40] sm:$0xff]   ;;  %v1574_v13 = vld [vmem:[#allocation2 + $0x98] sm:$0xff]   ;;  %s1897_s25 = scalar_lea.sflag [#allocation4], %s189_s19  ;;  %s1162_s26 = ssub.s32 (%p1828_p5), 13, %s1857_s5 }
  0x28   : > { %s198_s6 = scalar_select %p197_p6, %s1857_s5, 12  ;;  %1388 = vmatprep.subr.bf16.mxu1 %v1563_v14  ;;  %v230_v23 = vsub.s32 0, %v1868_v22  ;;  %v1874_v24 = vld [vmem:[%s1959_s2] sm:$0xff] }
  0x29   : > { %s1888_s24 = scalar_lea.vmem [#allocation5], %s1506_s20  ;;  %p1163_p8 = scmp.lt.s32.totalorder (%p1828_p5), %s1162_s26, 7 }
  0x2a   : > { %s1253_s7 = sshll.u32 %s198_s6, 3  ;;  %1377 = vmatpush3.bf16.msra.mxu0 %v1561_v1  ;;  %v231_v25 = vrot.slane %v1874_v24, %v230_v23 }
  0x2b   : > { %s200_s10 = scalar_lea.vmem %s1957_s0, %s1253_s7  ;;  %1389 = vmatpush3.bf16.msra.mxu1 %v1563_v14  ;;  %v1575_v14 = vld [vmem:[#allocation2 + $0x90] sm:$0xff]  }
  0x2c   : > { %v217_v2 = vld [vmem:[%s200_s10] sm:$0xff]  ;;  %v218_v3 = vld [vmem:[%s200_s10 + $0x8] sm:$0xff]  ;;  %v219_v5 = vld [vmem:[%s200_s10 + $0x10] sm:$0xff]  ;;  %1390 = vmatprep.subr.bf16.mxu1 %v1564_v15 }
  0x2d   : > { %v224_v4 = vpack.c.bf16 %v218_v3, %v217_v2  ;;  %v220_v6 = vld [vmem:[%s200_s10 + $0x18] sm:$0xff]  ;;  %v221_v7 = vld [vmem:[%s200_s10 + $0x20] sm:$0xff]  ;;  %v222_v8 = vld [vmem:[%s200_s10 + $0x28] sm:$0xff] }
  0x2e   : > { %v225_v9 = vpack.c.bf16 %v220_v6, %v219_v5  ;;  %v226_v10 = vpack.c.bf16 %v222_v8, %v221_v7  ;;  %v223_v11 = vld [vmem:[%s200_s10 + $0x30] sm:$0xff] }
  0x2f   : > { %1378 = vmatprep.mubr.msk.bf16.mxu0 %vm244_vm0, %v224_v4  ;;  %v227_v12 = vpack.c.bf16 %v223_v11, %v223_v11  ;;  %1391 = vmatpush3.bf16.msra.mxu1 %v1564_v15  ;;  %v1572_v11 = vld [vmem:[#allocation2 + $0xa8] sm:$0xff]  }
  0x30   : > { %1379 = vmatmul.mubr.msk.bf16.vlgmr.msra.gmra.mxu0 %vm244_vm0, %v225_v9  ;;  %1392 = vmatprep.subr.bf16.mxu1 %v1565_v16  ;;  %v1570_v9 = vld [vmem:[#allocation2 + $0xb8] sm:$0xff]   ;;  %v1576_v15 = vld [vmem:[#allocation2 + $0x88] sm:$0xff]  }
  0x31   : > { %1382 = vmatprep.mubr.msk.bf16.mxu0 %vm244_vm0, %v226_v10  ;;  %1410 = vmatprep.subr.bf16.mxu0 %v1570_v9  ;;  %v1571_v10 = vld [vmem:[#allocation2 + $0xb0] sm:$0xff]  }
  0x32   : > { %1411 = vmatpush3.bf16.msra.mxu0 %v1570_v9  ;;  %v1583_v9 = vld [vmem:[#allocation2 + $0xd0] sm:$0xff]  }
  0x33   : > { %1393 = vmatpush3.bf16.msra.mxu1 %v1565_v16  ;;  %1412 = vmatprep.subr.bf16.mxu0 %v1571_v10  ;;  %v1577_v16 = vld [vmem:[#allocation2 + $0x80] sm:$0xff]  }
  0x34   : > { %1394 = vmatprep.subr.bf16.mxu1 %v1566_v17 }
  0x36   : > { %1413 = vmatpush3.bf16.msra.mxu0 %v1571_v10  ;;  %v1584_v10 = vld [vmem:[#allocation2 + $0xc8] sm:$0xff]  }
  0x37   : > { %1395 = vmatpush3.bf16.msra.mxu1 %v1566_v17  ;;  %1414 = vmatprep.subr.bf16.mxu0 %v1572_v11  ;;  %v372_v17 = vsub.s32 1, %v1868_v22 }
  0x38   : > { %1383 = vmatmul.mubr.msk.bf16.gmra.mxu0 %vm244_vm0, %v227_v12  ;;  %1396 = vmatprep.subr.bf16.mxu1 %v1567_v18  ;;  %v1573_v12 = vld [vmem:[#allocation2 + $0xa0] sm:$0xff]  }
  0x3a   : > { %1415 = vmatpush3.bf16.msra.mxu0 %v1572_v11  ;;  %v1585_v11 = vld [vmem:[#allocation2 + $0xc0] sm:$0xff]  }
  0x3b   : > { %1397 = vmatpush3.bf16.msra.mxu1 %v1567_v18  ;;  %1416 = vmatprep.subr.bf16.mxu0 %v1573_v12  ;;  %v373_v18 = vrot.slane %v1874_v24, %v372_v17 }
  0x3c   : > { %1398 = vmatprep.subr.bf16.mxu1 %v1568_v19 }
  0x3e   : > { %1417 = vmatpush3.bf16.msra.mxu0 %v1573_v12  ;;  %v537_v12 = vsub.s32 2, %v1868_v22 }
  0x3f   : > { %1399 = vmatpush3.bf16.msra.mxu1 %v1568_v19  ;;  %1418 = vmatprep.subr.bf16.mxu0 %v1574_v13 }
  0x40   : > { %1400 = vmatprep.subr.bf16.mxu1 %v1569_v20 }
  0x42   : > { %1419 = vmatpush3.bf16.msra.mxu0 %v1574_v13  ;;  %v538_v13 = vrot.slane %v1874_v24, %v537_v12 }
  0x43   : > { %1401 = vmatpush3.bf16.msra.mxu1 %v1569_v20  ;;  %1420 = vmatprep.subr.bf16.mxu0 %v1575_v14 }
  0x46   : > { %1421 = vmatpush3.bf16.msra.mxu0 %v1575_v14 }
  0x47   : > { %1422 = vmatprep.subr.bf16.mxu0 %v1576_v15 }
  0x4a   : > { %1423 = vmatpush3.bf16.msra.mxu0 %v1576_v15 }
  0x4b   : > { %1424 = vmatprep.subr.bf16.mxu0 %v1577_v16 }
  0x4e   : > { %1425 = vmatpush3.bf16.msra.mxu0 %v1577_v16 }
  0xf0   : > { %v1380_v26 = vpop.f32.mrf.mxu0 }
  0xf1   : > { %v300_v27 = vadd.f32 %v1380_v26, %v231_v25 }
  0xf2   : > { %v291_v28 = vpop.f32.mrf.mxu0 }
  0xf3   : > { %v292_v29 = vadd.f32 %v291_v28, %v231_v25  ;;  %v323_v30 = vmul.f32 0.5, %v300_v27 }
  0xf4   : > { %v1381_v31 = vpop.f32.mrf.mxu0 }
  0xf5   : > { %v321_v32 = vmul.f32 0.5, %v292_v29  ;;  %v303_v33 = vadd.f32 %v1381_v31, %v231_v25 }
  0xf6   : > { %v294_v34 = vpop.f32.mrf.mxu0 }
  0xf7   : > { %1602 = vtanh.f32 %v321_v32  ;;  %v324_v35 = vmul.f32 0.5, %v303_v33  ;;  %v295_v36 = vadd.f32 %v294_v34, %v231_v25 }
  0xf8   : > { %1604 = vtanh.f32 %v323_v30  ;;  %v1384_v37 = vpop.f32.mrf.mxu0 }
  0xf9   : > { %1606 = vtanh.f32 %v324_v35  ;;  %v322_v38 = vmul.f32 0.5, %v295_v36  ;;  %v316_v39 = vadd.f32 %v1384_v37, %v231_v25 }
  0xfa   : > { %v307_v40 = vpop.f32.mrf.mxu0 }
  0xfb   : > { %1608 = vtanh.f32 %v322_v38  ;;  %v327_v41 = vmul.f32 0.5, %v316_v39  ;;  %v308_v42 = vadd.f32 %v307_v40, %v231_v25 }
  0xfc   : > { %v1385_v43 = vpop.f32.mrf.mxu0 }
  0xfd   : > { %v325_v44 = vmul.f32 0.5, %v308_v42  ;;  %1610 = vtanh.f32 %v327_v41 }
  0xfe   : > { %v310_v45 = vpop.f32.mrf.mxu0 }
  0xff   : > { %1612 = vtanh.f32 %v325_v44  ;;  %v311_v46 = vadd.f32 %v310_v45, %v231_v25 }
 0x101   : > { %v326_v47 = vmul.f32 0.5, %v311_v46 }
 0x103   : > { %1614 = vtanh.f32 %v326_v47 }
 0x104   : > { %v1603_v48 = vpop.eup %1602 }
 0x105   : > { %v1605_v49 = vpop.eup %1604  ;;  %v335_v52 = vadd.f32 1.0, %v1603_v48 }
 0x106   : > { %v1607_v50 = vpop.eup %1606  ;;  %v337_v54 = vadd.f32 1.0, %v1605_v49 }
 0x107   : > { %v338_v51 = vadd.f32 1.0, %v1607_v50  ;;  %v342_v58 = vmul.f32 0.5, %v335_v52 }
 0x108   : > { %v1609_v53 = vpop.eup %1608  ;;  %v344_v61 = vmul.f32 0.5, %v337_v54 }
 0x109   : > { %v336_v55 = vadd.f32 1.0, %v1609_v53  ;;  %v345_v56 = vmul.f32 0.5, %v338_v51 }
 0x10a   : > { %v1611_v57 = vpop.eup %1610 }
 0x10b   : > { %v343_v59 = vmul.f32 0.5, %v336_v55  ;;  %v350_v63 = vpack.c.bf16 %v345_v56, %v344_v61  ;;  %v341_v0 = vadd.f32 1.0, %v1611_v57 }
 0x10c   : > { %v1613_v60 = vpop.eup %1612 }
 0x10d   : > { %v349_v62 = vpack.c.bf16 %v343_v59, %v342_v58  ;;  %v339_v1 = vadd.f32 1.0, %v1613_v60  ;;  %v348_v4 = vmul.f32 0.5, %v341_v0 }
 0x10f   : > { %1402 = vmatprep.mubr.bf16.mxu1 %v349_v62  ;;  %v346_v5 = vmul.f32 0.5, %v339_v1  ;;  %v352_v8 = vpack.c.bf16 %v348_v4, %v348_v4  ;;  %v1578_v4 = vld [vmem:[#allocation2 + $0xf8] sm:$0xff]  }
 0x110   : > { %v1615_v2 = vpop.eup %1614  ;;  %1403 = vmatmul.mubr.bf16.vlgmr.msra.gmra.mxu1 %v350_v63  ;;  %1434 = vmatprep.subr.bf16.mxu1 %v1578_v4 }
 0x111   : > { %v340_v3 = vadd.f32 1.0, %v1615_v2  ;;  %1435 = vmatpush3.bf16.msra.mxu1 %v1578_v4  ;;  %v1591_v4 = vld [vmem:[#allocation2 + $0x110] sm:$0xff]  }
 0x113   : > { %v347_v6 = vmul.f32 0.5, %v340_v3 }
 0x115   : > { %v351_v7 = vpack.c.bf16 %v347_v6, %v346_v5  ;;  %v1579_v5 = vld [vmem:[#allocation2 + $0xf0] sm:$0xff]   ;;  %v1580_v6 = vld [vmem:[#allocation2 + $0xe8] sm:$0xff]  }
 0x116   : > { %1436 = vmatprep.subr.bf16.mxu1 %v1579_v5 }
 0x117   : > { %1406 = vmatprep.mubr.bf16.mxu1 %v351_v7  ;;  %1437 = vmatpush3.bf16.msra.mxu1 %v1579_v5  ;;  %v1581_v7 = vld [vmem:[#allocation2 + $0xe0] sm:$0xff]   ;;  %v1592_v5 = vld [vmem:[#allocation2 + $0x108] sm:$0xff]  }
 0x118   : > { %1407 = vmatmul.mubr.bf16.gmra.mxu1 %v352_v8  ;;  %1438 = vmatprep.subr.bf16.mxu1 %v1580_v6  ;;  %v1582_v8 = vld [vmem:[#allocation2 + $0xd8] sm:$0xff]  }
 0x11b   : > { %1439 = vmatpush3.bf16.msra.mxu1 %v1580_v6  ;;  %v1593_v6 = vld [vmem:[#allocation2 + $0x100] sm:$0xff]  }
 0x11c   : > { %1440 = vmatprep.subr.bf16.mxu1 %v1581_v7 }
 0x11f   : > { %1441 = vmatpush3.bf16.msra.mxu1 %v1581_v7  ;;  %v702_v7 = vsub.s32 3, %v1868_v22 }
 0x120   : > { %1442 = vmatprep.subr.bf16.mxu1 %v1582_v8 }
 0x123   : > { %1443 = vmatpush3.bf16.msra.mxu1 %v1582_v8  ;;  %v703_v8 = vrot.slane %v1874_v24, %v702_v7 }
 0x124   : > { %1444 = vmatprep.subr.bf16.mxu1 %v1583_v9 }
 0x127   : > { %1445 = vmatpush3.bf16.msra.mxu1 %v1583_v9 }
 0x128   : > { %1446 = vmatprep.subr.bf16.mxu1 %v1584_v10 }
 0x12b   : > { %1447 = vmatpush3.bf16.msra.mxu1 %v1584_v10 }
 0x12c   : > { %1448 = vmatprep.subr.bf16.mxu1 %v1585_v11 }
 0x12f   : > { %1449 = vmatpush3.bf16.msra.mxu1 %v1585_v11 }
 0x1d0   : > { %v1404_v19 = vpop.f32.mrf.mxu1 }
 0x1d1   : > { %v465_v20 = vadd.f32 %v1404_v19, %v373_v18 }
 0x1d2   : > { %v456_v21 = vpop.f32.mrf.mxu1 }
 0x1d3   : > { %v457_v23 = vadd.f32 %v456_v21, %v373_v18  ;;  %v488_v25 = vmul.f32 0.5, %v465_v20 }
 0x1d4   : > { %v1405_v26 = vpop.f32.mrf.mxu1 }
 0x1d5   : > { %v486_v27 = vmul.f32 0.5, %v457_v23  ;;  %v468_v28 = vadd.f32 %v1405_v26, %v373_v18 }
 0x1d6   : > { %v459_v29 = vpop.f32.mrf.mxu1 }
 0x1d7   : > { %1616 = vtanh.f32 %v486_v27  ;;  %v489_v30 = vmul.f32 0.5, %v468_v28  ;;  %v460_v31 = vadd.f32 %v459_v29, %v373_v18 }
 0x1d8   : > { %1618 = vtanh.f32 %v488_v25  ;;  %v1408_v32 = vpop.f32.mrf.mxu1 }
 0x1d9   : > { %1620 = vtanh.f32 %v489_v30  ;;  %v487_v33 = vmul.f32 0.5, %v460_v31  ;;  %v481_v34 = vadd.f32 %v1408_v32, %v373_v18 }
 0x1da   : > { %v472_v35 = vpop.f32.mrf.mxu1 }
 0x1db   : > { %1622 = vtanh.f32 %v487_v33  ;;  %v492_v36 = vmul.f32 0.5, %v481_v34  ;;  %v473_v37 = vadd.f32 %v472_v35, %v373_v18 }
 0x1dc   : > { %v1409_v38 = vpop.f32.mrf.mxu1 }
 0x1dd   : > { %v490_v39 = vmul.f32 0.5, %v473_v37  ;;  %1624 = vtanh.f32 %v492_v36 }
 0x1de   : > { %v475_v40 = vpop.f32.mrf.mxu1 }
 0x1df   : > { %1626 = vtanh.f32 %v490_v39  ;;  %v476_v41 = vadd.f32 %v475_v40, %v373_v18 }
 0x1e1   : > { %v491_v42 = vmul.f32 0.5, %v476_v41 }
 0x1e3   : > { %1628 = vtanh.f32 %v491_v42 }
 0x1e4   : > { %v1617_v43 = vpop.eup %1616 }
 0x1e5   : > { %v1619_v44 = vpop.eup %1618  ;;  %v500_v46 = vadd.f32 1.0, %v1617_v43 }
 0x1e6   : > { %v1621_v45 = vpop.eup %1620  ;;  %v502_v49 = vadd.f32 1.0, %v1619_v44 }
 0x1e7   : > { %v503_v47 = vadd.f32 1.0, %v1621_v45  ;;  %v507_v53 = vmul.f32 0.5, %v500_v46 }
 0x1e8   : > { %v1623_v48 = vpop.eup %1622  ;;  %v509_v56 = vmul.f32 0.5, %v502_v49 }
 0x1e9   : > { %v501_v50 = vadd.f32 1.0, %v1623_v48  ;;  %v510_v51 = vmul.f32 0.5, %v503_v47 }
 0x1ea   : > { %v1625_v52 = vpop.eup %1624 }
 0x1eb   : > { %v508_v54 = vmul.f32 0.5, %v501_v50  ;;  %v515_v58 = vpack.c.bf16 %v510_v51, %v509_v56  ;;  %v506_v59 = vadd.f32 1.0, %v1625_v52 }
 0x1ec   : > { %v1627_v55 = vpop.eup %1626 }
 0x1ed   : > { %v514_v57 = vpack.c.bf16 %v508_v54, %v507_v53  ;;  %v504_v60 = vadd.f32 1.0, %v1627_v55  ;;  %v513_v63 = vmul.f32 0.5, %v506_v59 }
 0x1ef   : > { %1426 = vmatprep.mubr.bf16.mxu0 %v514_v57  ;;  %v511_v0 = vmul.f32 0.5, %v504_v60  ;;  %v517_v3 = vpack.c.bf16 %v513_v63, %v513_v63  ;;  %v1586_v63 = vld [vmem:[#allocation2 + $0x138] sm:$0xff]  }
 0x1f0   : > { %v1629_v61 = vpop.eup %1628  ;;  %1427 = vmatmul.mubr.bf16.vlgmr.msra.gmra.mxu0 %v515_v58  ;;  %1458 = vmatprep.subr.bf16.mxu0 %v1586_v63 }
 0x1f1   : > { %v505_v62 = vadd.f32 1.0, %v1629_v61  ;;  %1459 = vmatpush3.bf16.msra.mxu0 %v1586_v63  ;;  %v1599_v63 = vld [vmem:[#allocation2 + $0x150] sm:$0xff]  }
 0x1f3   : > { %v512_v1 = vmul.f32 0.5, %v505_v62 }
 0x1f5   : > { %v516_v2 = vpack.c.bf16 %v512_v1, %v511_v0  ;;  %v1587_v0 = vld [vmem:[#allocation2 + $0x130] sm:$0xff]   ;;  %v1588_v1 = vld [vmem:[#allocation2 + $0x128] sm:$0xff]  }
 0x1f6   : > { %1460 = vmatprep.subr.bf16.mxu0 %v1587_v0 }
 0x1f7   : > { %1430 = vmatprep.mubr.bf16.mxu0 %v516_v2  ;;  %1461 = vmatpush3.bf16.msra.mxu0 %v1587_v0  ;;  %v1589_v2 = vld [vmem:[#allocation2 + $0x120] sm:$0xff]   ;;  %v1600_v0 = vld [vmem:[#allocation2 + $0x148] sm:$0xff]  }
 0x1f8   : > { %1431 = vmatmul.mubr.bf16.gmra.mxu0 %v517_v3  ;;  %1462 = vmatprep.subr.bf16.mxu0 %v1588_v1  ;;  %v1590_v3 = vld [vmem:[#allocation2 + $0x118] sm:$0xff]  }
 0x1fb   : > { %1463 = vmatpush3.bf16.msra.mxu0 %v1588_v1  ;;  %v1601_v1 = vld [vmem:[#allocation2 + $0x140] sm:$0xff]  }
 0x1fc   : > { %1464 = vmatprep.subr.bf16.mxu0 %v1589_v2 }
 0x1ff   : > { %1465 = vmatpush3.bf16.msra.mxu0 %v1589_v2  ;;  %v867_v2 = vsub.s32 4, %v1868_v22 }
 0x200   : > { %1466 = vmatprep.subr.bf16.mxu0 %v1590_v3 }
 0x203   : > { %1467 = vmatpush3.bf16.msra.mxu0 %v1590_v3  ;;  %v868_v3 = vrot.slane %v1874_v24, %v867_v2 }
 0x204   : > { %1468 = vmatprep.subr.bf16.mxu0 %v1591_v4 }
 0x207   : > { %1469 = vmatpush3.bf16.msra.mxu0 %v1591_v4 }
 0x208   : > { %1470 = vmatprep.subr.bf16.mxu0 %v1592_v5 }
 0x20b   : > { %1471 = vmatpush3.bf16.msra.mxu0 %v1592_v5 }
 0x20c   : > { %1472 = vmatprep.subr.bf16.mxu0 %v1593_v6 }
 0x20f   : > { %1473 = vmatpush3.bf16.msra.mxu0 %v1593_v6 }
 0x2b0   : > { %v1428_v14 = vpop.f32.mrf.mxu0 }
 0x2b1   : > { %v630_v15 = vadd.f32 %v1428_v14, %v538_v13 }
 0x2b2   : > { %v621_v16 = vpop.f32.mrf.mxu0 }
 0x2b3   : > { %v622_v17 = vadd.f32 %v621_v16, %v538_v13  ;;  %v653_v18 = vmul.f32 0.5, %v630_v15 }
 0x2b4   : > { %v1429_v19 = vpop.f32.mrf.mxu0 }
 0x2b5   : > { %v651_v20 = vmul.f32 0.5, %v622_v17  ;;  %v633_v21 = vadd.f32 %v1429_v19, %v538_v13 }
 0x2b6   : > { %v624_v23 = vpop.f32.mrf.mxu0 }
 0x2b7   : > { %1630 = vtanh.f32 %v651_v20  ;;  %v654_v25 = vmul.f32 0.5, %v633_v21  ;;  %v625_v26 = vadd.f32 %v624_v23, %v538_v13 }
 0x2b8   : > { %1632 = vtanh.f32 %v653_v18  ;;  %v1432_v27 = vpop.f32.mrf.mxu0 }
 0x2b9   : > { %1634 = vtanh.f32 %v654_v25  ;;  %v652_v28 = vmul.f32 0.5, %v625_v26  ;;  %v646_v29 = vadd.f32 %v1432_v27, %v538_v13 }
 0x2ba   : > { %v637_v30 = vpop.f32.mrf.mxu0 }
 0x2bb   : > { %1636 = vtanh.f32 %v652_v28  ;;  %v657_v31 = vmul.f32 0.5, %v646_v29  ;;  %v638_v32 = vadd.f32 %v637_v30, %v538_v13 }
 0x2bc   : > { %v1433_v33 = vpop.f32.mrf.mxu0 }
 0x2bd   : > { %v655_v34 = vmul.f32 0.5, %v638_v32  ;;  %1638 = vtanh.f32 %v657_v31 }
 0x2be   : > { %v640_v35 = vpop.f32.mrf.mxu0 }
 0x2bf   : > { %1640 = vtanh.f32 %v655_v34  ;;  %v641_v36 = vadd.f32 %v640_v35, %v538_v13 }
 0x2c1   : > { %v656_v37 = vmul.f32 0.5, %v641_v36 }
 0x2c3   : > { %1642 = vtanh.f32 %v656_v37 }
 0x2c4   : > { %v1631_v38 = vpop.eup %1630 }
 0x2c5   : > { %v1633_v39 = vpop.eup %1632  ;;  %v665_v41 = vadd.f32 1.0, %v1631_v38 }
 0x2c6   : > { %v1635_v40 = vpop.eup %1634  ;;  %v667_v44 = vadd.f32 1.0, %v1633_v39 }
 0x2c7   : > { %v668_v42 = vadd.f32 1.0, %v1635_v40  ;;  %v672_v48 = vmul.f32 0.5, %v665_v41 }
 0x2c8   : > { %v1637_v43 = vpop.eup %1636  ;;  %v674_v51 = vmul.f32 0.5, %v667_v44 }
 0x2c9   : > { %v666_v45 = vadd.f32 1.0, %v1637_v43  ;;  %v675_v46 = vmul.f32 0.5, %v668_v42 }
 0x2ca   : > { %v1639_v47 = vpop.eup %1638 }
 0x2cb   : > { %v673_v49 = vmul.f32 0.5, %v666_v45  ;;  %v680_v53 = vpack.c.bf16 %v675_v46, %v674_v51  ;;  %v671_v54 = vadd.f32 1.0, %v1639_v47 }
 0x2cc   : > { %v1641_v50 = vpop.eup %1640 }
 0x2cd   : > { %v679_v52 = vpack.c.bf16 %v673_v49, %v672_v48  ;;  %v669_v55 = vadd.f32 1.0, %v1641_v50  ;;  %v678_v58 = vmul.f32 0.5, %v671_v54 }
 0x2cf   : > { %1450 = vmatprep.mubr.bf16.mxu1 %v679_v52  ;;  %v676_v59 = vmul.f32 0.5, %v669_v55  ;;  %v682_v62 = vpack.c.bf16 %v678_v58, %v678_v58  ;;  %v1594_v58 = vld [vmem:[#allocation2 + $0x178] sm:$0xff]  }
 0x2d0   : > { %v1643_v56 = vpop.eup %1642  ;;  %1451 = vmatmul.mubr.bf16.vlgmr.msra.gmra.mxu1 %v680_v53  ;;  %1482 = vmatprep.subr.bf16.mxu1 %v1594_v58 }
 0x2d1   : > { %v670_v57 = vadd.f32 1.0, %v1643_v56  ;;  %1483 = vmatpush3.bf16.msra.mxu1 %v1594_v58 }
 0x2d3   : > { %v677_v60 = vmul.f32 0.5, %v670_v57 }
 0x2d5   : > { %v681_v61 = vpack.c.bf16 %v677_v60, %v676_v59  ;;  %v1595_v59 = vld [vmem:[#allocation2 + $0x170] sm:$0xff]   ;;  %v1596_v60 = vld [vmem:[#allocation2 + $0x168] sm:$0xff]  }
 0x2d6   : > { %1484 = vmatprep.subr.bf16.mxu1 %v1595_v59 }
 0x2d7   : > { %1454 = vmatprep.mubr.bf16.mxu1 %v681_v61  ;;  %1485 = vmatpush3.bf16.msra.mxu1 %v1595_v59  ;;  %v1597_v61 = vld [vmem:[#allocation2 + $0x160] sm:$0xff]  }
 0x2d8   : > { %1455 = vmatmul.mubr.bf16.gmra.mxu1 %v682_v62  ;;  %1486 = vmatprep.subr.bf16.mxu1 %v1596_v60  ;;  %v1598_v62 = vld [vmem:[#allocation2 + $0x158] sm:$0xff]  }
 0x2db   : > { %1487 = vmatpush3.bf16.msra.mxu1 %v1596_v60 }
 0x2dc   : > { %1488 = vmatprep.subr.bf16.mxu1 %v1597_v61 }
 0x2df   : > { %1489 = vmatpush3.bf16.msra.mxu1 %v1597_v61 }
 0x2e0   : > { %1490 = vmatprep.subr.bf16.mxu1 %v1598_v62 }
 0x2e3   : > { %1491 = vmatpush3.bf16.msra.mxu1 %v1598_v62 }
 0x2e4   : > { %1492 = vmatprep.subr.bf16.mxu1 %v1599_v63 }
 0x2e7   : > { %1493 = vmatpush3.bf16.msra.mxu1 %v1599_v63 }
 0x2e8   : > { %1494 = vmatprep.subr.bf16.mxu1 %v1600_v0 }
 0x2eb   : > { %1495 = vmatpush3.bf16.msra.mxu1 %v1600_v0 }
 0x2ec   : > { %1496 = vmatprep.subr.bf16.mxu1 %v1601_v1 }
 0x2ef   : > { %1497 = vmatpush3.bf16.msra.mxu1 %v1601_v1 }
 0x390   : > { %v1452_v9 = vpop.f32.mrf.mxu1 }
 0x391   : > { %v795_v10 = vadd.f32 %v1452_v9, %v703_v8 }
 0x392   : > { %v786_v11 = vpop.f32.mrf.mxu1 }
 0x393   : > { %v787_v12 = vadd.f32 %v786_v11, %v703_v8  ;;  %v818_v13 = vmul.f32 0.5, %v795_v10 }
 0x394   : > { %v1453_v14 = vpop.f32.mrf.mxu1 }
 0x395   : > { %v816_v15 = vmul.f32 0.5, %v787_v12  ;;  %v798_v16 = vadd.f32 %v1453_v14, %v703_v8 }
 0x396   : > { %v789_v17 = vpop.f32.mrf.mxu1 }
 0x397   : > { %1644 = vtanh.f32 %v816_v15  ;;  %v819_v18 = vmul.f32 0.5, %v798_v16  ;;  %v790_v19 = vadd.f32 %v789_v17, %v703_v8 }
 0x398   : > { %1646 = vtanh.f32 %v818_v13  ;;  %v1456_v20 = vpop.f32.mrf.mxu1 }
 0x399   : > { %1648 = vtanh.f32 %v819_v18  ;;  %v817_v21 = vmul.f32 0.5, %v790_v19  ;;  %v811_v23 = vadd.f32 %v1456_v20, %v703_v8 }
 0x39a   : > { %v802_v25 = vpop.f32.mrf.mxu1 }
 0x39b   : > { %1650 = vtanh.f32 %v817_v21  ;;  %v822_v26 = vmul.f32 0.5, %v811_v23  ;;  %v803_v27 = vadd.f32 %v802_v25, %v703_v8 }
 0x39c   : > { %v1457_v28 = vpop.f32.mrf.mxu1 }
 0x39d   : > { %v820_v29 = vmul.f32 0.5, %v803_v27  ;;  %1652 = vtanh.f32 %v822_v26 }
 0x39e   : > { %v805_v30 = vpop.f32.mrf.mxu1 }
 0x39f   : > { %1654 = vtanh.f32 %v820_v29  ;;  %v806_v31 = vadd.f32 %v805_v30, %v703_v8 }
 0x3a1   : > { %v821_v32 = vmul.f32 0.5, %v806_v31 }
 0x3a3   : > { %1656 = vtanh.f32 %v821_v32 }
 0x3a4   : > { %v1645_v33 = vpop.eup %1644 }
 0x3a5   : > { %v1647_v34 = vpop.eup %1646  ;;  %v830_v36 = vadd.f32 1.0, %v1645_v33 }
 0x3a6   : > { %v1649_v35 = vpop.eup %1648  ;;  %v832_v39 = vadd.f32 1.0, %v1647_v34 }
 0x3a7   : > { %v833_v37 = vadd.f32 1.0, %v1649_v35  ;;  %v837_v43 = vmul.f32 0.5, %v830_v36 }
 0x3a8   : > { %v1651_v38 = vpop.eup %1650  ;;  %v839_v46 = vmul.f32 0.5, %v832_v39 }
 0x3a9   : > { %v831_v40 = vadd.f32 1.0, %v1651_v38  ;;  %v840_v41 = vmul.f32 0.5, %v833_v37 }
 0x3aa   : > { %v1653_v42 = vpop.eup %1652 }
 0x3ab   : > { %v838_v44 = vmul.f32 0.5, %v831_v40  ;;  %v845_v48 = vpack.c.bf16 %v840_v41, %v839_v46  ;;  %v836_v49 = vadd.f32 1.0, %v1653_v42 }
 0x3ac   : > { %v1655_v45 = vpop.eup %1654 }
 0x3ad   : > { %v844_v47 = vpack.c.bf16 %v838_v44, %v837_v43  ;;  %v834_v50 = vadd.f32 1.0, %v1655_v45  ;;  %v843_v53 = vmul.f32 0.5, %v836_v49 }
 0x3af   : > { %1474 = vmatprep.mubr.bf16.mxu0 %v844_v47  ;;  %v841_v54 = vmul.f32 0.5, %v834_v50  ;;  %v847_v57 = vpack.c.bf16 %v843_v53, %v843_v53  ;;  %v1032_v53 = vsub.s32 5, %v1868_v22 }
 0x3b0   : > { %v1657_v51 = vpop.eup %1656  ;;  %1475 = vmatmul.mubr.bf16.vlgmr.msra.gmra.mxu0 %v845_v48 }
 0x3b1   : > { %v835_v52 = vadd.f32 1.0, %v1657_v51 }
 0x3b3   : > { %v842_v55 = vmul.f32 0.5, %v835_v52 }
 0x3b5   : > { %v846_v56 = vpack.c.bf16 %v842_v55, %v841_v54  ;;  %v1033_v54 = vrot.slane %v1874_v24, %v1032_v53 }
 0x3b7   : > { %1478 = vmatprep.mubr.bf16.mxu0 %v846_v56 }
 0x3b8   : > { %1479 = vmatmul.mubr.bf16.gmra.mxu0 %v847_v57 }
 0x470   : > { %v1476_v4 = vpop.f32.mrf.mxu0 }
 0x471   : > { %v960_v5 = vadd.f32 %v1476_v4, %v868_v3 }
 0x472   : > { %v951_v6 = vpop.f32.mrf.mxu0 }
 0x473   : > { %v952_v7 = vadd.f32 %v951_v6, %v868_v3  ;;  %v983_v8 = vmul.f32 0.5, %v960_v5 }
 0x474   : > { %v1477_v9 = vpop.f32.mrf.mxu0 }
 0x475   : > { %v981_v10 = vmul.f32 0.5, %v952_v7  ;;  %v963_v11 = vadd.f32 %v1477_v9, %v868_v3 }
 0x476   : > { %v954_v12 = vpop.f32.mrf.mxu0 }
 0x477   : > { %1658 = vtanh.f32 %v981_v10  ;;  %v984_v13 = vmul.f32 0.5, %v963_v11  ;;  %v955_v14 = vadd.f32 %v954_v12, %v868_v3 }
 0x478   : > { %1660 = vtanh.f32 %v983_v8  ;;  %v1480_v15 = vpop.f32.mrf.mxu0 }
 0x479   : > { %1662 = vtanh.f32 %v984_v13  ;;  %v982_v16 = vmul.f32 0.5, %v955_v14  ;;  %v976_v17 = vadd.f32 %v1480_v15, %v868_v3 }
 0x47a   : > { %v967_v18 = vpop.f32.mrf.mxu0 }
 0x47b   : > { %1664 = vtanh.f32 %v982_v16  ;;  %v987_v19 = vmul.f32 0.5, %v976_v17  ;;  %v968_v20 = vadd.f32 %v967_v18, %v868_v3 }
 0x47c   : > { %v1481_v21 = vpop.f32.mrf.mxu0 }
 0x47d   : > { %v985_v23 = vmul.f32 0.5, %v968_v20  ;;  %1666 = vtanh.f32 %v987_v19 }
 0x47e   : > { %v970_v25 = vpop.f32.mrf.mxu0 }
 0x47f   : > { %1668 = vtanh.f32 %v985_v23  ;;  %v971_v26 = vadd.f32 %v970_v25, %v868_v3 }
 0x481   : > { %v986_v27 = vmul.f32 0.5, %v971_v26 }
 0x483   : > { %1670 = vtanh.f32 %v986_v27 }
 0x484   : > { %v1659_v28 = vpop.eup %1658 }
 0x485   : > { %v1661_v29 = vpop.eup %1660  ;;  %v995_v31 = vadd.f32 1.0, %v1659_v28 }
 0x486   : > { %v1663_v30 = vpop.eup %1662  ;;  %v997_v34 = vadd.f32 1.0, %v1661_v29 }
 0x487   : > { %v998_v32 = vadd.f32 1.0, %v1663_v30  ;;  %v1002_v38 = vmul.f32 0.5, %v995_v31 }
 0x488   : > { %v1665_v33 = vpop.eup %1664  ;;  %v1004_v41 = vmul.f32 0.5, %v997_v34 }
 0x489   : > { %v996_v35 = vadd.f32 1.0, %v1665_v33  ;;  %v1005_v36 = vmul.f32 0.5, %v998_v32 }
 0x48a   : > { %v1667_v37 = vpop.eup %1666 }
 0x48b   : > { %v1003_v39 = vmul.f32 0.5, %v996_v35  ;;  %v1010_v43 = vpack.c.bf16 %v1005_v36, %v1004_v41  ;;  %v1001_v44 = vadd.f32 1.0, %v1667_v37 }
 0x48c   : > { %v1669_v40 = vpop.eup %1668 }
 0x48d   : > { %v1009_v42 = vpack.c.bf16 %v1003_v39, %v1002_v38  ;;  %v999_v45 = vadd.f32 1.0, %v1669_v40  ;;  %v1008_v48 = vmul.f32 0.5, %v1001_v44 }
 0x48f   : > { %1498 = vmatprep.mubr.bf16.mxu1 %v1009_v42  ;;  %v1006_v49 = vmul.f32 0.5, %v999_v45  ;;  %v1012_v52 = vpack.c.bf16 %v1008_v48, %v1008_v48 }
 0x490   : > { %v1671_v46 = vpop.eup %1670  ;;  %1499 = vmatmul.mubr.bf16.vlgmr.msra.gmra.mxu1 %v1010_v43 }
 0x491   : > { %v1000_v47 = vadd.f32 1.0, %v1671_v46 }
 0x493   : > { %v1007_v50 = vmul.f32 0.5, %v1000_v47 }
 0x495   : > { %v1011_v51 = vpack.c.bf16 %v1007_v50, %v1006_v49 }
 0x497   : > { %1502 = vmatprep.mubr.bf16.mxu1 %v1011_v51 }
 0x498   : > { %1503 = vmatmul.mubr.bf16.gmra.mxu1 %v1012_v52 }
 0x550   : > { %v1500_v55 = vpop.f32.mrf.mxu1 }
 0x551   : > { %v1125_v56 = vadd.f32 %v1500_v55, %v1033_v54 }
 0x552   : > { %v1116_v57 = vpop.f32.mrf.mxu1 }
 0x553   : > { %1148 = vst [vmem:[%s1888_s24 + $0x10] sm:$0xff] %v1125_v56  ;;  %v1117_v58 = vadd.f32 %v1116_v57, %v1033_v54 }
 0x554   : > { %v1501_v59 = vpop.f32.mrf.mxu1 }
 0x555   : > { %1146 = vst [vmem:[%s1888_s24] sm:$0xff] %v1117_v58  ;;  %v1128_v22 = vadd.f32 %v1501_v59, %v1033_v54 }
 0x556   : > { %v1119_v60 = vpop.f32.mrf.mxu1 }
 0x557   : > { %1149 = vst [vmem:[%s1888_s24 + $0x18] sm:$0xff] %v1128_v22  ;;  %v1120_v24 = vadd.f32 %v1119_v60, %v1033_v54 }
 0x558   : > { %v1504_v61 = vpop.f32.mrf.mxu1 }
 0x559   : > { %1147 = vst [vmem:[%s1888_s24 + $0x8] sm:$0xff] %v1120_v24  ;;  %v1141_v62 = vadd.f32 %v1504_v61, %v1033_v54 }
 0x55a   : > { %v1132_v63 = vpop.f32.mrf.mxu1 }
 0x55b   : > { %1152 = vst [vmem:[%s1888_s24 + $0x30] sm:$0xff] %v1141_v62  ;;  %v1133_v0 = vadd.f32 %v1132_v63, %v1033_v54 }
 0x55c   : > { %v1505_v1 = vpop.f32.mrf.mxu1 }
 0x55d   : > { %1150 = vst [vmem:[%s1888_s24 + $0x20] sm:$0xff] %v1133_v0  ;;  %1160 = sbr.rel (!%p1828_p5) target bundleno = 1405 (0x57d), region = 40 }
 0x55e   : > { %v1135_v2 = vpop.f32.mrf.mxu1 }
 0x55f   : > { %v1136_v3 = vadd.f32 %v1135_v2, %v1033_v54 }
 0x561   : > { %1151 = vst [vmem:[%s1888_s24 + $0x28] sm:$0xff] %v1136_v3 }
 0x562   : > { %s1970_s26 = smov (!%p1163_p8, %s1162_s26), 7 }
 0x563   : > { %s1902_s27 = sshll.u32 %s1970_s26, 7 }
 0x564   : > { %s1167_s28 = ssub.s32 896, %s1902_s27 }
 0x565   : > { %1168 = vsyncadd %s1897_s25, %s1167_s28  ;;  %p1301_p9 = scmp.ne.s32.totalorder %s1902_s27, 0  ;;  %s1307_s29 = smul.u32 896, %s1811_s16 }
 0x566   : > { %s1173_s30 = sshll.u32 %s1888_s24, 4  ;;  %s1767_s7 = smov [#allocation5]   ;;  %s1914_s30 = int_to_ptr.vmem [resolvable:$true] %s1173_s30 }
 0x567   : > { %s1912_s6 = scalar_lea.hbm %s1960_s3, %s1307_s29  ;;  %s1698_s5 = scalar_lea.vmem %s1914_s30, %s1902_s27 }
 0x568   : > { %p1699_p5 = scmp.ne.s32.totalorder %s1914_s30, %s1698_s5  ;;  %s1702_s8 = sshll.u32 %s1767_s7, 4  ;;  %s1703_s8 = int_to_ptr.vmem [resolvable:$false] %s1702_s8 }
 0x569   : > { %s1704_s16 = scalar_lea.vmem %s1703_s8, 1792  ;;  %p1705_p12 = scmp.lt.s32.totalorder %s1914_s30, %s1703_s8 }
 0x56a   : > { %p1700_p10 = pnand %p1699_p5, %p1301_p9  ;;  %p1706_p13 = scmp.lt.s32.totalorder %s1704_s16, %s1698_s5 }
 0x56c   : > { %p1701_p11 = pneg %p1700_p10  ;;  %p1707_p0 = por %p1706_p13, %p1705_p12 }
 0x56e   : > { %p1708_p1 = pnand %p1707_p0, %p1701_p11 }
 0x570   : > { %1711 = shalt.err (!%p1708_p1)
}
 0x571   : > { %s1712_s9 = scalar_lea.hbm %s1912_s6, %s1902_s27  ;;  %s1716_s17 = scalar_lea.hbm %s1960_s3, 1664 }
 0x572   : > { %p1713_p2 = scmp.ne.s32.totalorder %s1912_s6, %s1712_s9  ;;  %p1717_p7 = scmp.lt.s32.totalorder %s1912_s6, %s1960_s3 }
 0x573   : > { %p1718_p6 = scmp.lt.s32.totalorder %s1716_s17, %s1712_s9 }
 0x574   : > { %p1714_p3 = pnand %p1713_p2, %p1301_p9 }
 0x575   : > { %p1719_p8 = por %p1718_p6, %p1717_p7 }
 0x576   : > { %p1715_p4 = pneg %p1714_p3 }
 0x578   : > { %p1720_p5 = pnand %p1719_p8, %p1715_p4 }
 0x57a   : > { %1723 = shalt.err (!%p1720_p5)
}
 0x57b   : > { %s1768_s24 = smov 128   ;;  %s1769_s26 = smov 8  }
 0x57c   : > { %1179 = dma.vmem_to_hbm [thread:$0]  (%p1301_p9), %s1914_s30, %s1902_s27, %s1912_s6, %s1897_s25, %s1768_s24, %s1768_s24, %s1769_s26  }
 0x57d PF: > { %p1522_p10 = scmp.ge.s32.totalorder %s1762_s15, 2  ;;  %s1188_s28 = sand.u32 1, %s1750_s12  }
 0x57e   : > { %p1964_p11 = scmp.ne.s32.totalorder %s1962_s23, 0  ;;  %s1189_s29 = scalar_lea.sflag [#allocation4], %s1188_s28 }
 0x580   : > { %p1517_p12 = pnand %p1522_p10, %p1964_p11 }
 0x582   : > { %p1518_p13 = pneg %p1517_p12 }
 0x584   : > { %1745 = dma.done.wait (%p1518_p13), %s1189_s29, 896  }
 0x585   : > { %1747 = vsyncadd (%p1518_p13), %s1189_s29, 4294966400  ;;  %p14_p0 = scmp.ge.s32.totalorder %s1815_s18, 4   ;;  %s1965_s12 = smov %s1754_s13 }
 0x586   : > { %s1966_s13 = smov %s1758_s14  ;;  %s1967_s14 = smov %s1826_s21 }
 0x587   : > { %s1968_s15 = smov %s1815_s18  ;;  %16 = sbr.rel (!%p14_p0) target bundleno = 4 (0x4), region = 77 }
 0x58c   :  { %1194 = vsyncpa [#allocation3], 1 }
 0x58d   :  { %1196 = vsyncpa [#allocation3 + $0x1], 1 }
 0x58e   :  { %1197 = vsyncpa [#allocation4], 1 }
 0x58f   :  { %1199 = vsyncpa [#allocation4 + $0x1], 1 }

</bundles_post_ra>
